<compile_context>
chip_gen: v6e
topology: v6e:2x2x1
jax: 0.10.0
libtpu: 0.0.40
codegen_flags: <defaults>
</compile_context>

<pallas_src>
import math
import jax
import jax.numpy as jnp
from jax.experimental import pallas as pl
from jax.experimental.pallas import tpu as pltpu


# ---------------------------------------------------------------------------
# Kernel 1: per-block partial BatchNorm statistics of y = W @ x.
# Recomputes the (K = C, tiny) 1x1-conv matmul instead of storing y to HBM.
# ---------------------------------------------------------------------------
def stats_kernel(x_ref, w_ref, s_ref, ss_ref):
    x = x_ref[0]                                                   # (C, hw)
    y = jnp.dot(w_ref[...], x, preferred_element_type=jnp.float32)  # (Cout, hw)
    s_ref[0, 0] = jnp.sum(y, axis=1, keepdims=True)                # (Cout, 1)
    ss_ref[0, 0] = jnp.sum(y * y, axis=1, keepdims=True)           # (Cout, 1)


# ---------------------------------------------------------------------------
# Kernel 2: fused 1x1 conv + BatchNorm affine + ReLU, lane-dense output tile.
# ---------------------------------------------------------------------------
def conv_bn_relu_kernel(x_ref, w_ref, scale_ref, shift_ref, o_ref):
    y = jnp.dot(w_ref[...], x_ref[0], preferred_element_type=jnp.float32)
    o_ref[0] = jnp.maximum(y * scale_ref[...] + shift_ref[...], 0.0)


def _pick_hw_tile(hw, target=2048):
    """Largest multiple of 128 that divides hw and is <= target (else full hw)."""
    if hw % 128 != 0:
        return hw          # full-extent block: still a legal BlockSpec (ragged)
    t = min(max(target - target % 128, 128), hw)
    while hw % t != 0:
        t -= 128
    return t


def subpixel_upsample(x, weight, gamma, beta, *, eps=1e-5, hw_tile=2048):
    """x: (N, C, H, W) f32, weight: (4C, C, 1, 1), gamma/beta: (4C,)."""
    N, C, H, W = x.shape
    Cout = weight.shape[0]              # 4 * C
    HW = H * W
    M = N * HW

    # channels-first matrices: pure reshape (no transpose / extra HBM pass)
    x3 = x.reshape(N, C, HW).astype(jnp.float32)          # (N, C, HW)
    w_mat = weight.reshape(Cout, C).astype(jnp.float32)   # (Cout, C)

    t = _pick_hw_tile(HW, hw_tile)
    num_hw = HW // t
    grid = (N, num_hw)

    x_spec = pl.BlockSpec((1, C, t), lambda n, j: (n, 0, j))
    w_spec = pl.BlockSpec((Cout, C), lambda n, j: (0, 0))
    stat_spec = pl.BlockSpec((1, 1, Cout, 1), lambda n, j: (n, j, 0, 0))

    # ---- Pass 1: partial per-channel sum / sum-of-squares ------------------
    s_part, ss_part = pl.pallas_call(
        stats_kernel,
        out_shape=(jax.ShapeDtypeStruct((N, num_hw, Cout, 1), jnp.float32),
                   jax.ShapeDtypeStruct((N, num_hw, Cout, 1), jnp.float32)),
        grid_spec=pltpu.PrefetchScalarGridSpec(
            num_scalar_prefetch=0,
            grid=grid,
            in_specs=[x_spec, w_spec],
            out_specs=[stat_spec, stat_spec]),
        compiler_params=pltpu.CompilerParams(
            dimension_semantics=("parallel", "parallel")),
    )(x3, w_mat)

    # Finalize batch statistics (tiny per-channel math -> plain JAX glue).
    s = jnp.sum(s_part, axis=(0, 1)).reshape(Cout)
    ss = jnp.sum(ss_part, axis=(0, 1)).reshape(Cout)
    mean = s / M
    var = ss / M - mean * mean          # biased variance (BN training mode)
    # TODO(synk): E[y^2]-E[y]^2 is cancellation-prone if |mean| >> std;
    # consider a centered/Welford pass for ill-conditioned inputs.
    inv = gamma.astype(jnp.float32) / jnp.sqrt(var + eps)
    scale = inv.reshape(Cout, 1)
    shift = (beta.astype(jnp.float32) - mean * inv).reshape(Cout, 1)

    # ---- Pass 2: fused conv + BN + ReLU, single HBM pass over the output ---
    y = pl.pallas_call(
        conv_bn_relu_kernel,
        out_shape=jax.ShapeDtypeStruct((N, Cout, HW), jnp.float32),
        grid_spec=pltpu.PrefetchScalarGridSpec(
            num_scalar_prefetch=0,
            grid=grid,
            in_specs=[x_spec, w_spec,
                      pl.BlockSpec((Cout, 1), lambda n, j: (0, 0)),
                      pl.BlockSpec((Cout, 1), lambda n, j: (0, 0))],
            out_specs=pl.BlockSpec((1, Cout, t), lambda n, j: (n, 0, j))),
        compiler_params=pltpu.CompilerParams(
            dimension_semantics=("parallel", "parallel")),
    )(x3, w_mat, scale, shift)

    # PixelShuffle(2): out[n, c, 2h+i, 2w+j] = y[n, 4c + 2i + j, h, w]
    y = y.reshape(N, C, 2, 2, H, W)
    y = jnp.transpose(y, (0, 1, 4, 2, 5, 3)).reshape(N, C, 2 * H, 2 * W)
    return y


# ---------------------------------------------------------------------------
# Deterministic parameter construction (ICNR over a kaiming-uniform subkernel).
# conv bias disabled because norm_type='syncbatch' (enable_bias -> False).
# ---------------------------------------------------------------------------
def make_params(key, C, ks=1):
    a = math.sqrt(5.0)
    fan_in = C * ks * ks
    gain = math.sqrt(2.0 / (1.0 + a * a))
    bound = math.sqrt(3.0) * gain / math.sqrt(fan_in)
    sub = jax.random.uniform(key, (C, C, ks, ks), jnp.float32, -bound, bound)
    # ICNR: each group of 4 consecutive output channels shares the subkernel.
    weight = jnp.repeat(sub, 4, axis=0)            # (4C, C, ks, ks)
    gamma = jnp.ones((4 * C,), jnp.float32)        # BatchNorm default affine
    beta = jnp.zeros((4 * C,), jnp.float32)
    return weight, gamma, beta


# ---------------------------------------------------------------------------
# Pure-JAX reference (matches PyTorch forward in training mode).
# ---------------------------------------------------------------------------
def reference(x, weight, gamma, beta, eps=1e-5):
    N, C, H, W = x.shape
    Cout = weight.shape[0]
    y = jnp.einsum('nchw,oc->nohw', x, weight.reshape(Cout, C))
    mean = y.mean(axis=(0, 2, 3), keepdims=True)
    var = y.var(axis=(0, 2, 3), keepdims=True)
    y = gamma.reshape(1, -1, 1, 1) * (y - mean) / jnp.sqrt(var + eps) \
        + beta.reshape(1, -1, 1, 1)
    y = jnp.maximum(y, 0.0)
    y = y.reshape(N, C, 2, 2, H, W)
    y = jnp.transpose(y, (0, 1, 4, 2, 5, 3)).reshape(N, C, 2 * H, 2 * W)
    return y


if __name__ == "__main__":
    key = jax.random.PRNGKey(0)
    kx, kw = jax.random.split(key)

    N, C, H, W = 2, 4, 16, 16
    x = jax.random.normal(kx, (N, C, H, W), jnp.float32)
    weight, gamma, beta = make_params(kw, C, ks=1)
    # TODO(synk): only ks=1/stride=1/padding=0 (the module defaults) are
    # implemented; general kxk conv would need an im2col or halo BlockSpec.

    out = subpixel_upsample(x, weight, gamma, beta)
    out = jax.block_until_ready(out)

    ref = reference(x, weight, gamma, beta)
    assert out.shape == (N, C, 2 * H, 2 * W), out.shape
    assert jnp.allclose(out, ref, atol=1e-4, rtol=1e-4), \
        float(jnp.max(jnp.abs(out - ref)))

    print("KERNEL_OK")
</pallas_src>

<mosaic_0001>
module attributes {stable_mosaic.version = 11 : i64} {
  func.func @stats_kernel(%arg0: i32, %arg1: i32, %arg2: memref<1x4x256xf32, #tpu.memory_space<vmem>>, %arg3: memref<16x4xf32, #tpu.memory_space<vmem>>, %arg4: memref<1x1x16x1xf32, #tpu.memory_space<vmem>>, %arg5: memref<1x1x16x1xf32, #tpu.memory_space<vmem>>) attributes {dimension_semantics = [#tpu.dimension_semantics<parallel>, #tpu.dimension_semantics<parallel>], iteration_bounds = array<i64: 2, 1>, scalar_prefetch = 0 : i64, scratch_operands = 0 : i64, tpu.core_type = #tpu.core_type<tc>, window_params = [{transform_indices = @transform_0, window_bounds = array<i64: 1, 4, 256>}, {pipeline_mode = #tpu.pipeline_mode<synchronous>, transform_indices = @transform_1, window_bounds = array<i64: 16, 4>}, {transform_indices = @transform_2, window_bounds = array<i64: 1, 1, 16, 1>}, {transform_indices = @transform_3, window_bounds = array<i64: 1, 1, 16, 1>}]} {
    %c0 = arith.constant 0 : index
    %c0_0 = arith.constant 0 : index
    %c0_1 = arith.constant 0 : index
    %0 = vector.load %arg2[%c0, %c0_0, %c0_1] : memref<1x4x256xf32, #tpu.memory_space<vmem>>, vector<1x4x256xf32>
    %1 = vector.shape_cast %0 : vector<1x4x256xf32> to vector<4x256xf32>
    %c0_2 = arith.constant 0 : index
    %c0_3 = arith.constant 0 : index
    %2 = vector.load %arg3[%c0_2, %c0_3] : memref<16x4xf32, #tpu.memory_space<vmem>>, vector<16x4xf32>
    %cst = arith.constant dense<0.000000e+00> : vector<16x256xf32>
    %3 = tpu.matmul %2, %1, %cst {dimension_numbers = #tpu.dot_dimension_numbers<[1], [0], [0], [1], [0, 0, 1, 1], [], []>} : vector<16x4xf32>, vector<4x256xf32>, vector<16x256xf32> -> vector<16x256xf32>
    %cst_4 = arith.constant dense<0.000000e+00> : vector<16xf32>
    %4 = vector.multi_reduction <add>, %3, %cst_4 [1] : vector<16x256xf32> to vector<16xf32>
    %5 = vector.shape_cast %4 : vector<16xf32> to vector<16x1xf32>
    %c0_5 = arith.constant 0 : index
    %c0_6 = arith.constant 0 : index
    %c0_7 = arith.constant 0 : index
    %c0_8 = arith.constant 0 : index
    %6 = vector.load %arg4[%c0_5, %c0_6, %c0_7, %c0_8] : memref<1x1x16x1xf32, #tpu.memory_space<vmem>>, vector<1x1x16x1xf32>
    %7 = vector.shape_cast %6 : vector<1x1x16x1xf32> to vector<16x1xf32>
    %8 = vector.shape_cast %5 : vector<16x1xf32> to vector<1x1x16x1xf32>
    tpu.vector_store %arg4[%c0_5, %c0_6, %c0_7, %c0_8], %8 {strides = array<i32>} : memref<1x1x16x1xf32, #tpu.memory_space<vmem>>, vector<1x1x16x1xf32>,
    %9 = arith.mulf %3, %3 : vector<16x256xf32>
    %cst_9 = arith.constant dense<0.000000e+00> : vector<16xf32>
    %10 = vector.multi_reduction <add>, %9, %cst_9 [1] : vector<16x256xf32> to vector<16xf32>
    %11 = vector.shape_cast %10 : vector<16xf32> to vector<16x1xf32>
    %c0_10 = arith.constant 0 : index
    %c0_11 = arith.constant 0 : index
    %c0_12 = arith.constant 0 : index
    %c0_13 = arith.constant 0 : index
    %12 = vector.load %arg5[%c0_10, %c0_11, %c0_12, %c0_13] : memref<1x1x16x1xf32, #tpu.memory_space<vmem>>, vector<1x1x16x1xf32>
    %13 = vector.shape_cast %12 : vector<1x1x16x1xf32> to vector<16x1xf32>
    %14 = vector.shape_cast %11 : vector<16x1xf32> to vector<1x1x16x1xf32>
    tpu.vector_store %arg5[%c0_10, %c0_11, %c0_12, %c0_13], %14 {strides = array<i32>} : memref<1x1x16x1xf32, #tpu.memory_space<vmem>>, vector<1x1x16x1xf32>,
    return
  }
  func.func @transform_0(%arg0: i32, %arg1: i32) -> (i32, i32, i32) {
    %c0_i32 = arith.constant 0 : i32
    %c0_i32_0 = arith.constant 0 : i32
    return %arg0, %c0_i32, %arg1 : i32, i32, i32
  }
  func.func @transform_1(%arg0: i32, %arg1: i32) -> (i32, i32) {
    %c0_i32 = arith.constant 0 : i32
    %c0_i32_0 = arith.constant 0 : i32
    %c0_i32_1 = arith.constant 0 : i32
    return %c0_i32, %c0_i32_0 : i32, i32
  }
  func.func @transform_2(%arg0: i32, %arg1: i32) -> (i32, i32, i32, i32) {
    %c0_i32 = arith.constant 0 : i32
    %c0_i32_0 = arith.constant 0 : i32
    %c0_i32_1 = arith.constant 0 : i32
    return %arg0, %arg1, %c0_i32, %c0_i32_0 : i32, i32, i32, i32
  }
  func.func @transform_3(%arg0: i32, %arg1: i32) -> (i32, i32, i32, i32) {
    %c0_i32 = arith.constant 0 : i32
    %c0_i32_0 = arith.constant 0 : i32
    %c0_i32_1 = arith.constant 0 : i32
    return %arg0, %arg1, %c0_i32, %c0_i32_0 : i32, i32, i32, i32
  }
}

</mosaic_0001>

<bundles_post_ra>
// kernel: tpu_custom_call.1
= control target key start
LH: loop header
LB: loop body
LE: loop exit
PB: predicated region body
PF: predicated region fallthrough
CT: control target
= control target key end

     0   :  { %s582_s12 = smov 0   ;;  %s584_s13 = smov 0   ;;  %s628_s0 = inlined_call_operand.vmem [shape: f32[2,4,256], index: 0, kind: input, shape index: {}]   ;;  %s629_s1 = inlined_call_operand.vmem [shape: f32[16,4], index: 1, kind: input, shape index: {}]   ;;  %s630_s2 = inlined_call_operand.vmem [shape: f32[2,1,16,1], index: 2, kind: output, shape index: {0}]   ;;  %s631_s3 = inlined_call_operand.vmem [shape: f32[2,1,16,1], index: 3, kind: output, shape index: {1}]  }
   0x1   :  { %s586_s14 = smov 0  }
   0x2 LB: > { %s26_s15 = sadd.s32 1, %s555_s13  ;;  %p493_p0 = scmp.ge.s32.totalorder %s559_s14, 1  ;;  %s559_s14 = sphi %s586_s14, %s14_s14   ;;  %s555_s13 = sphi %s584_s13, %s633_s13   ;;  %s551_s12 = sphi %s582_s12, %s632_s12  }
   0x3   : > { %p28_p1 = scmp.ge.s32.totalorder %s26_s15, 2  ;;  %p163_p2 = scmp.lt.s32.totalorder %s559_s14, 3 }
   0x5   : > { %s635_s15 = smov (%p28_p1, %s26_s15), 0  ;;  %p164_p3 = pnand %p493_p0, %p163_p2 }
   0x6   : > { %p205_p4 = scmp.lt.s32.totalorder (!%p164_p3), %s551_s12, 1 }
   0x7   : > { %167 = sbr.rel (%p164_p3) target bundleno = 362 (0x16a), region = 28 }
   0xc   : > { %v561_v0 = vmov 0.0   ;;  %s637_s12 = smov (!%p205_p4, %s551_s12), 1  ;;  %vm244_vm0 = vcmask 1043456   ;;  %v233_v3 = vld [vmem:[%s629_s1] sm:$0xff]  ;;  %vm237_vm1 = vcmask 31744   ;;  %v234_v4 = vld [vmem:[%s629_s1 + $0x8] sm:$0xff] }
   0xd   : > { %313 = vmatprep.mubr.f32.mxu0 %v561_v0  ;;  %319 = vmatprep.mubr.f32.mxu1 %v561_v0  ;;  %s506_s16 = sshll.u32 %s637_s12, 3  ;;  %s507_s24 = sshll.u32 %s637_s12, 4  ;;  %vm332_vm2 = vcmask 7168  }
   0xe   : > { %s212_s19 = scalar_lea.vmem %s628_s0, %s506_s16  ;;  %s222_s27 = scalar_lea.vmem %s630_s2, %s507_s24 }
   0xf   : > { %v232_v1 = vld [vmem:[%s212_s19] sm:$0xff]  ;;  %s231_s30 = scalar_lea.vmem %s631_s3, %s507_s24 }
  0x10   : > { %v236_v2 = vcombine.high %v232_v1, %v232_v1 }
  0x12   : > { %500 = vmatprep.subr.msk.mxu0 %vm244_vm0, %v236_v2  ;;  %509 = vmatprep.subr.msk.mxu1 %vm244_vm0, %v236_v2 }
  0x13   : > { %501 = vmatpush1.msk.msra.mxu0 %vm244_vm0, %v232_v1  ;;  %510 = vmatpush1.msk.msra.mxu1 %vm244_vm0, %v232_v1 }
  0x14   : > { %502 = vmatmul.mubr.msk.f32.vlgmr.msra.gmra.mxu0 %vm237_vm1, %v233_v3  ;;  %503 = vmatmul.mubr.msk.f32.vlgmr.msra.gmra.mxu1 %vm237_vm1, %v234_v4 }
  0xd4   : > { %v315_v5 = vpop.f32.mrf.mxu0  ;;  %v321_v6 = vpop.f32.mrf.mxu1 }
  0xd5   : > { %v335_v9 = vmul.f32 %v315_v5, %v315_v5  ;;  %v337_v12 = vmul.f32 %v321_v6, %v321_v6 }
  0xd6   : > { %v317_v7 = vpop.f32.mrf.mxu0  ;;  %v323_v8 = vpop.f32.mrf.mxu1 }
  0xd7   : > { %v336_v10 = vmul.f32 %v317_v7, %v317_v7  ;;  %v326_v11 = vadd.f32 %v317_v7, %v315_v5  ;;  %v338_v13 = vmul.f32 %v323_v8, %v323_v8  ;;  %v329_v15 = vadd.f32 %v323_v8, %v321_v6 }
  0xd9   : > { %327 = vadd.xlane.f32.xlu0 %v326_v11  ;;  %v339_v14 = vadd.f32 %v336_v10, %v335_v9  ;;  %v342_v16 = vadd.f32 %v338_v13, %v337_v12 }
  0xdb   : > { %340 = vadd.xlane.f32.xlu1 %v339_v14 }
  0xdd   : > { %330 = vadd.xlane.f32.xlu0 %v329_v15 }
  0xdf   : > { %343 = vadd.xlane.f32.xlu1 %v342_v16 }
 0x162   : > { %v328_v17 = vpop.xlane.xlu0 %327 }
 0x163   : > { %333 = vst.msk [vmem:[%s222_s27] sm:$0xff] %vm332_vm2, %v328_v17 }
 0x164   : > { %v341_v18 = vpop.xlane.xlu1 %340 }
 0x165   : > { %345 = vst.msk [vmem:[%s231_s30] sm:$0xff] %vm332_vm2, %v341_v18 }
 0x166   : > { %v331_v19 = vpop.xlane.xlu0 %330 }
 0x167   : > { %334 = vst.msk [vmem:[%s222_s27 + $0x8] sm:$0xff] %vm332_vm2, %v331_v19 }
 0x168   : > { %v344_v20 = vpop.xlane.xlu1 %343 }
 0x169   : > { %346 = vst.msk [vmem:[%s231_s30 + $0x8] sm:$0xff] %vm332_vm2, %v344_v20 }
 0x16a PF: > { %s14_s14 = sadd.s32 1, %s559_s14   ;;  %s632_s12 = smov %s555_s13 }
 0x16b   : > { %p11_p5 = scmp.ge.s32.totalorder %s14_s14, 4   ;;  %s633_s13 = smov %s635_s15 }
 0x16d   :  { %13 = sbr.rel (!%p11_p5) target bundleno = 2 (0x2), region = 70 }

</bundles_post_ra>
